<compile_context>
chip_gen: v7x
topology: tpu7x:2x2x1
jax: 0.10.0
libtpu: 0.0.40
codegen_flags: <defaults>
</compile_context>

<pallas_src>
import jax
import jax.numpy as jnp
import numpy as np
from jax.experimental import pallas as pl
from jax.experimental.pallas import tpu as pltpu


def _gather_kernel(perm_ref, x_ref, out_ref):
    # out_tile = P @ x_tile. P is exactly 0/1 with at most one 1 per output
    # row, so the MXU matmul with an f32 accumulator is bit-exact.
    out_ref[...] = jnp.dot(
        perm_ref[...], x_ref[...], preferred_element_type=jnp.float32
    ).astype(out_ref.dtype)


def _pick_feature_tile(D, cap=4096):
    # Single full-extent block when it fits comfortably in VMEM; otherwise a
    # fixed lane-dense (multiple-of-128) tile and a cdiv grid (Pallas masks
    # the ragged last block).
    if D <= cap:
        return D
    return cap


def token_dropper_from_samples(x, samples, drop_chance=0.25, feature_tile=None):
    """Batched token dropper.

    x:       [B, L, D] tokens
    samples: [B, L] float32 uniform draws (the torch.rand equivalent)

    Returns (out [B, L, D], mask [B, L] int32, count [B] int32).
    """
    B, L, D = x.shape

    # --- keep-mask, compaction destinations and permutation matrix in plain
    # JAX (tiny, O(B*L*L)); keeps the kernel a pure streaming gather. ---
    keep = samples > jnp.float32(drop_chance)                 # (B, L) bool
    keep_i = keep.astype(jnp.int32)
    dest = jnp.cumsum(keep_i, axis=-1) - 1                    # (B, L) int32
    rows = jnp.arange(L, dtype=jnp.int32)[None, :, None]      # (1, L_out, 1)
    perm = (keep[:, None, :] & (rows == dest[:, None, :])).astype(x.dtype)  # (B, L, L)
    mask = keep_i                                             # (B, L)
    count = keep_i.sum(axis=-1)                               # (B,)

    td = feature_tile if feature_tile is not None else _pick_feature_tile(D)
    nd = pl.cdiv(D, td)

    itemsize = jnp.dtype(x.dtype).itemsize
    cost = pl.CostEstimate(
        flops=2 * B * L * L * D,
        transcendentals=0,
        bytes_accessed=(2 * B * L * D + B * L * L) * itemsize,
    )

    out = pl.pallas_call(
        _gather_kernel,
        out_shape=jax.ShapeDtypeStruct((B, L, D), x.dtype),
        grid=(B, nd),
        in_specs=[
            # permutation matrix: resident per batch row, reused across D tiles
            pl.BlockSpec((None, L, L), lambda b, d: (b, 0, 0)),
            # x feature tile
            pl.BlockSpec((None, L, td), lambda b, d: (b, 0, d)),
        ],
        out_specs=pl.BlockSpec((None, L, td), lambda b, d: (b, 0, d)),
        compiler_params=pltpu.CompilerParams(
            dimension_semantics=("parallel", "parallel"),
            vmem_limit_bytes=32 * 1024 * 1024,
        ),
        cost_estimate=cost,
    )(perm, x)

    return out, mask, count


def token_dropper(x, key, drop_chance=0.25):
    """Single-sequence TokenDropper.forward equivalent.

    x: [L, D] tokens; key: jax PRNG key.
    Returns (out [L, D], mask [L] int32, count [] int32).
    """
    L, D = x.shape
    sample = jax.random.uniform(key, (L,), dtype=jnp.float32)  # torch.rand equivalent
    out, mask, count = token_dropper_from_samples(
        x[None], sample[None], drop_chance=drop_chance
    )
    return out[0], mask[0], count[0]


if __name__ == "__main__":
    drop_chance = 0.25
    root = jax.random.PRNGKey(0)
    k_x, k_s, k_xb, k_sb = jax.random.split(root, 4)

    # --- single sequence, single full-extent feature tile ---
    L, D = 16, 128
    x = jax.random.normal(k_x, (L, D), dtype=jnp.float32)
    out, mask, count = token_dropper(x, k_s, drop_chance=drop_chance)
    jax.block_until_ready((out, mask, count))

    sample_host = np.asarray(jax.random.uniform(k_s, (L,), dtype=jnp.float32))
    expected_mask = sample_host > drop_chance
    mask_np = np.asarray(mask).astype(bool)
    assert (mask_np == expected_mask).all()

    x_np, out_np = np.asarray(x), np.asarray(out)
    n = int(np.asarray(count))
    assert n == int(mask_np.sum())
    np.testing.assert_allclose(out_np[:n], x_np[mask_np], rtol=1e-6, atol=1e-6)
    np.testing.assert_allclose(out_np[n:], 0.0, atol=1e-6)

    # --- batched + tiled-D path (grid (B, 2), both axes "parallel") ---
    B, Lb, Db = 2, 32, 512
    xb = jax.random.normal(k_xb, (B, Lb, Db), dtype=jnp.float32)
    keys = jax.random.split(k_sb, B)
    samples = jnp.stack(
        [jax.random.uniform(k, (Lb,), dtype=jnp.float32) for k in keys]
    )
    outb, maskb, countb = token_dropper_from_samples(
        xb, samples, drop_chance=drop_chance, feature_tile=256
    )
    jax.block_until_ready((outb, maskb, countb))

    samples_np = np.asarray(samples)
    for b in range(B):
        m = samples_np[b] > drop_chance
        assert (np.asarray(maskb[b]).astype(bool) == m).all()
        nb = int(np.asarray(countb[b]))
        assert nb == int(m.sum())
        np.testing.assert_allclose(
            np.asarray(outb[b])[:nb], np.asarray(xb[b])[m], rtol=1e-6, atol=1e-6
        )
        np.testing.assert_allclose(np.asarray(outb[b])[nb:], 0.0, atol=1e-6)

    print("KERNEL_OK")
</pallas_src>

<mosaic_0001>
module attributes {stable_mosaic.version = 11 : i64} {
  func.func @_gather_kernel(%arg0: i32, %arg1: i32, %arg2: memref<1x16x16xf32, #tpu.memory_space<vmem>>, %arg3: memref<1x16x128xf32, #tpu.memory_space<vmem>>, %arg4: memref<1x16x128xf32, #tpu.memory_space<vmem>>) attributes {dimension_semantics = [#tpu.dimension_semantics<parallel>, #tpu.dimension_semantics<parallel>], iteration_bounds = array<i64: 1, 1>, scalar_prefetch = 0 : i64, scratch_operands = 0 : i64, tpu.core_type = #tpu.core_type<tc>, window_params = [{transform_indices = @transform_0, window_bounds = array<i64: 1, 16, 16>}, {transform_indices = @transform_1, window_bounds = array<i64: 1, 16, 128>}, {transform_indices = @transform_2, window_bounds = array<i64: 1, 16, 128>}]} {
    %c0 = arith.constant 0 : index
    %c0_0 = arith.constant 0 : index
    %c0_1 = arith.constant 0 : index
    %0 = vector.load %arg2[%c0, %c0_0, %c0_1] : memref<1x16x16xf32, #tpu.memory_space<vmem>>, vector<1x16x16xf32>
    %1 = vector.shape_cast %0 : vector<1x16x16xf32> to vector<16x16xf32>
    %c0_2 = arith.constant 0 : index
    %c0_3 = arith.constant 0 : index
    %c0_4 = arith.constant 0 : index
    %2 = vector.load %arg3[%c0_2, %c0_3, %c0_4] : memref<1x16x128xf32, #tpu.memory_space<vmem>>, vector<1x16x128xf32>
    %3 = vector.shape_cast %2 : vector<1x16x128xf32> to vector<16x128xf32>
    %cst = arith.constant dense<0.000000e+00> : vector<16x128xf32>
    %4 = tpu.matmul %1, %3, %cst {dimension_numbers = #tpu.dot_dimension_numbers<[1], [0], [0], [1], [0, 0, 1, 1], [], []>} : vector<16x16xf32>, vector<16x128xf32>, vector<16x128xf32> -> vector<16x128xf32>
    %c0_5 = arith.constant 0 : index
    %c0_6 = arith.constant 0 : index
    %c0_7 = arith.constant 0 : index
    %5 = vector.load %arg4[%c0_5, %c0_6, %c0_7] : memref<1x16x128xf32, #tpu.memory_space<vmem>>, vector<1x16x128xf32>
    %6 = vector.shape_cast %5 : vector<1x16x128xf32> to vector<16x128xf32>
    %7 = vector.shape_cast %4 : vector<16x128xf32> to vector<1x16x128xf32>
    tpu.vector_store %arg4[%c0_5, %c0_6, %c0_7], %7 {strides = array<i32>} : memref<1x16x128xf32, #tpu.memory_space<vmem>>, vector<1x16x128xf32>,
    return
  }
  func.func @transform_0(%arg0: i32, %arg1: i32) -> (i32, i32, i32) {
    %c0_i32 = arith.constant 0 : i32
    %c0_i32_0 = arith.constant 0 : i32
    %c0_i32_1 = arith.constant 0 : i32
    return %arg0, %c0_i32, %c0_i32_0 : i32, i32, i32
  }
  func.func @transform_1(%arg0: i32, %arg1: i32) -> (i32, i32, i32) {
    %c0_i32 = arith.constant 0 : i32
    %c0_i32_0 = arith.constant 0 : i32
    return %arg0, %c0_i32, %arg1 : i32, i32, i32
  }
  func.func @transform_2(%arg0: i32, %arg1: i32) -> (i32, i32, i32) {
    %c0_i32 = arith.constant 0 : i32
    %c0_i32_0 = arith.constant 0 : i32
    return %arg0, %c0_i32, %arg1 : i32, i32, i32
  }
}

</mosaic_0001>

<bundles_post_ra>
// kernel: tpu_custom_call.1
= control target key start
LH: loop header
LB: loop body
LE: loop exit
PB: predicated region body
PF: predicated region fallthrough
CT: control target
= control target key end

     0   :  { %7 = vsyncpa [#allocation3], 0  ;;  %s305_s0 = inlined_call_operand.hbm [shape: f32[1,16,16], index: 0, kind: input, shape index: {}]   ;;  %s306_s1 = inlined_call_operand.hbm [shape: f32[1,16,128], index: 1, kind: input, shape index: {}]   ;;  %s307_s2 = inlined_call_operand.hbm [shape: f32[1,16,128], index: 2, kind: output, shape index: {}]  }
   0x1   :  { %8 = vsyncpa [#allocation6], 0 }
   0x2   :  { %9 = vsyncpa [#allocation4], 0  ;;  %s240_s9 = smov [#allocation2]   ;;  %s168_s13 = scalar_lea.hbm %s305_s0, 256 }
   0x3   :  { %s15_s10 = sshll.u32 %s240_s9, 4  ;;  %p169_p0 = scmp.ne.s32.totalorder %s305_s0, %s168_s13  ;;  %s16_s10 = int_to_ptr.vmem [resolvable:$true] %s15_s10 }
   0x4   :  { %p172_p1 = scmp.lt.u32.totalorder %s168_s13, %s305_s0 }
   0x6   :  { %p174_p2 = pnand %p172_p1, %p169_p0 }
   0x8   :  { %177 = shalt.err (!%p174_p2)
}
   0x9   :  { %s178_s18 = scalar_lea.vmem %s16_s10, 256  ;;  %p183_p4 = scmp.lt.s32.totalorder %s16_s10, %s16_s10 }
   0xa   :  { %p179_p3 = scmp.ne.s32.totalorder %s16_s10, %s178_s18  ;;  %p184_p5 = scmp.lt.s32.totalorder %s178_s18, %s178_s18 }
   0xc   :  { %p185_p6 = por %p184_p5, %p183_p4 }
   0xe   :  { %p186_p7 = pnand %p185_p6, %p179_p3 }
  0x10   :  { %189 = shalt.err (!%p186_p7)
}
  0x11   :  { %s241_s19 = smov 128   ;;  %s242_s20 = smov 8  }
  0x12   :  { %21 = dma.hbm_to_vmem [thread:$0]  %s305_s0, 256, %s16_s10, [#allocation3], %s241_s19, %s241_s19, %s242_s20  }
  0x13   :  { %s243_s23 = smov [#allocation5]   ;;  %s190_s27 = scalar_lea.hbm %s306_s1, 256 }
  0x14   :  { %s27_s24 = sshll.u32 %s243_s23, 4  ;;  %p191_p8 = scmp.ne.s32.totalorder %s306_s1, %s190_s27  ;;  %s28_s24 = int_to_ptr.vmem [resolvable:$true] %s27_s24 }
  0x15   :  { %p194_p9 = scmp.lt.u32.totalorder %s190_s27, %s306_s1 }
  0x17   :  { %p196_p10 = pnand %p194_p9, %p191_p8 }
  0x19   :  { %199 = shalt.err (!%p196_p10)
}
  0x1a   :  { %s200_s4 = scalar_lea.vmem %s28_s24, 256  ;;  %p205_p12 = scmp.lt.s32.totalorder %s28_s24, %s28_s24 }
  0x1b   :  { %p201_p11 = scmp.ne.s32.totalorder %s28_s24, %s200_s4  ;;  %p206_p13 = scmp.lt.s32.totalorder %s200_s4, %s200_s4 }
  0x1d   :  { %p207_p0 = por %p206_p13, %p205_p12 }
  0x1f   :  { %p208_p1 = pnand %p207_p0, %p201_p11 }
  0x21   :  { %211 = shalt.err (!%p208_p1)
}
  0x22   :  { %33 = dma.hbm_to_vmem [thread:$0]  %s306_s1, 256, %s28_s24, [#allocation6], %s241_s19, %s241_s19, %s242_s20  }
  0x23   :  { %234 = dma.done.wait [#allocation3], 256  }
  0x24   :  { %235 = vsyncadd [#allocation3], 4294967040 }
  0x25   :  { %236 = dma.done.wait [#allocation6], 256  }
  0x26   :  { %237 = vsyncadd [#allocation6], 4294967040  ;;  %vm44_vm0 = vcmask 130048   ;;  %v42_v0 = vld [vmem:[#allocation5] sm:$0xff]  ;;  %v43_v1 = vld [vmem:[#allocation5 + $0x8] sm:$0xff]  ;;  %s244_s6 = smov [#allocation7]  }
  0x27   :  { %v40_v2 = vld [vmem:[#allocation2] sm:$0xff]  ;;  %v159_v3 = vpack.c.bf16 %v43_v1, %v42_v0  ;;  %v41_v4 = vld [vmem:[#allocation2 + $0x8] sm:$0xff]  ;;  %s133_s7 = sshll.u32 %s244_s6, 4  ;;  %s134_s7 = int_to_ptr.vmem [resolvable:$true] %s133_s7 }
  0x28   :  { %156 = vmatprep.mubr.msk.f32.mxu0 %vm44_vm0, %v40_v2  ;;  %s212_s1 = scalar_lea.vmem %s134_s7, 256  ;;  %p217_p3 = scmp.lt.s32.totalorder %s134_s7, %s134_s7 }
  0x29   :  { %160 = vmatprep.subr.bf16.mxu0 %v159_v3  ;;  %p213_p2 = scmp.ne.s32.totalorder %s134_s7, %s212_s1  ;;  %p218_p4 = scmp.lt.s32.totalorder %s212_s1, %s212_s1 }
  0x2a   :  { %162 = vmatpush3.bf16.msra.mxu0 %v159_v3 }
  0x2b   :  { %p219_p5 = por %p218_p4, %p217_p3 }
  0x2d   :  { %157 = vmatmul.mubr.msk.f32.vlgmr.msra.gmra.mrb[0].mxu0 %vm44_vm0, %v41_v4  ;;  %p220_p6 = pnand %p219_p5, %p213_p2 }
 0x100   :  { %v158_v5 = vpop.f32.mrb[0].mxu0 }
 0x101   :  { %127 = vst [vmem:[#allocation7 + $0x8] sm:$0xff] %v158_v5  ;;  %v117_v6 = vpop.f32.mrb[1].mxu0 }
 0x102   :  { %126 = vst [vmem:[#allocation7] sm:$0xff] %v117_v6 }
 0x103   :  { %223 = shalt.err (!%p220_p6)
}
 0x104   :  { %s224_s10 = scalar_lea.hbm %s307_s2, 256 }
 0x105   :  { %p225_p7 = scmp.ne.s32.totalorder %s307_s2, %s224_s10  ;;  %p228_p8 = scmp.lt.u32.totalorder %s224_s10, %s307_s2 }
 0x107   :  { %p230_p9 = pnand %p228_p8, %p225_p7 }
 0x109   :  { %233 = shalt.err (!%p230_p9)
}
 0x10a   :  { %139 = dma.vmem_to_hbm [thread:$0]  %s134_s7, 256, %s307_s2, [#allocation4], %s241_s19, %s241_s19, %s242_s20  }
 0x10b   :  { %238 = dma.done.wait [#allocation4], 256  }
 0x10c   :  { %239 = vsyncadd [#allocation4], 4294967040 }
 0x10d   :  { %143 = vsyncpa [#allocation3], 1 }
 0x10e   :  { %144 = vsyncpa [#allocation6], 1 }
 0x10f   :  { %145 = vsyncpa [#allocation4], 1 }

</bundles_post_ra>
